<compile_context>
chip_gen: v7x
topology: tpu7x:2x2x1
jax: 0.10.0
libtpu: 0.0.40
codegen_flags: <defaults>
</compile_context>

<pallas_src>
import numpy as np
import jax
import jax.numpy as jnp
from jax.experimental import pallas as pl
from jax.experimental.pallas import tpu as pltpu


def _dwconv_kernel(x_ref, w_ref, o_ref):
    """Depthwise conv + in-kernel reflection pad for one block of (batch*channel) planes.

    x_ref: (P_blk, H, W)   unpadded input planes (VMEM)
    w_ref: (P_blk, K, K)   per-plane filters (VMEM)
    o_ref: (P_blk, H, W)   output planes (VMEM)
    """
    P_blk, H, W = x_ref.shape
    K = w_ref.shape[-1]
    pad = K // 2

    # Cast once (hoisted out of the tap loop); keep all compute in f32.
    xv = x_ref[...].astype(jnp.float32)      # (P_blk, H, W)
    wv = w_ref[...].astype(jnp.float32)      # (P_blk, K, K)

    # --- ReflectionPad2d(pad) built in VMEM (no HBM round trip) ------------------
    if pad > 0:
        # rows (sublane axis): top = rows pad..1, bottom = rows H-2..H-1-pad
        rows = ([xv[:, pad - t:pad - t + 1, :] for t in range(pad)]
                + [xv]
                + [xv[:, H - 2 - t:H - 1 - t, :] for t in range(pad)])
        xr = jnp.concatenate(rows, axis=1)   # (P_blk, H + 2*pad, W)
        # cols (lane axis): left = cols pad..1, right = cols W-2..W-1-pad
        cols = ([xr[:, :, pad - t:pad - t + 1] for t in range(pad)]
                + [xr]
                + [xr[:, :, W - 2 - t:W - 1 - t] for t in range(pad)])
        xp = jnp.concatenate(cols, axis=2)   # (P_blk, H + 2*pad, W + 2*pad)
    else:
        xp = xv

    # --- K*K shift-and-MAC; lane shifts (j) computed once, reused across i -------
    acc = jnp.zeros((P_blk, H, W), jnp.float32)
    for j in range(K):
        xj = xp[:, :, j:j + W]               # one lane-offset view per j (XLU)
        for i in range(K):                   # sublane-offset views are cheap
            w_ij = wv[:, i:i + 1, j:j + 1]   # (P_blk, 1, 1) per-plane scalar
            acc = acc + w_ij * xj[:, i:i + H, :]

    o_ref[...] = acc.astype(o_ref.dtype)


def custom_filter_layer(x: jax.Array, weight: jax.Array,
                        *, vmem_budget_bytes: int = 24 * 1024 * 1024) -> jax.Array:
    """Forward pass of CustomFilterLayer.

    x      : (N, C, H, W)
    weight : (C, K, K)  depthwise filters (PyTorch conv weight (C, 1, K, K) squeezed)
    returns: (N, C, H, W), same dtype as x
    """
    N, C, H, W = x.shape
    Cw, K, K2 = weight.shape
    assert Cw == C and K == K2, "weight must be (C, K, K)"
    # Even K with ReflectionPad2d(K//2) + valid conv would give (H+1, W+1) outputs.
    assert K % 2 == 1, "only odd kernel sizes are supported (matches tested module config)"
    pad = K // 2
    assert pad < H and pad < W, "ReflectionPad2d requires padding < input spatial dims"

    # Fuse batch and channel into one plane axis; tile weights so plane p uses
    # weight[p % C] (depthwise / groups=channels semantics).
    P = N * C
    xf = x.reshape(P, H, W)
    wf = jnp.tile(weight, (N, 1, 1))                         # (P, K, K), tiny

    in_b = jnp.dtype(x.dtype).itemsize
    w_b = jnp.dtype(weight.dtype).itemsize
    # Per-plane VMEM footprint: double-buffered in/out blocks + ~5 f32 temporaries
    # (cast, row-padded, fully padded, per-j view, accumulator). Cap so blocks fit
    # all generations (v7x has only 64 MiB physical VMEM).
    per_p = H * W * (2 * in_b + 2 * in_b + 5 * 4)
    max_blk = int(max(1, min(P, vmem_budget_bytes // max(per_p, 1))))
    if P >= 2:
        # Prefer >= 2 grid steps: enables compute/DMA overlap and dual-TC on v7x.
        max_blk = min(max_blk, (P + 1) // 2)
    p_blk = max_blk
    while P % p_blk:            # largest divisor of P not exceeding the cap
        p_blk -= 1
    nb = P // p_blk

    cost = pl.CostEstimate(
        flops=2 * K * K * P * H * W,
        transcendentals=0,
        bytes_accessed=P * H * W * 2 * in_b + P * K * K * w_b,
    )

    out = pl.pallas_call(
        _dwconv_kernel,
        out_shape=jax.ShapeDtypeStruct((P, H, W), x.dtype),
        grid_spec=pltpu.PrefetchScalarGridSpec(
            num_scalar_prefetch=0,
            grid=(nb,),
            in_specs=[
                pl.BlockSpec((p_blk, H, W), lambda b: (b, 0, 0)),
                pl.BlockSpec((p_blk, K, K), lambda b: (b, 0, 0)),
            ],
            out_specs=pl.BlockSpec((p_blk, H, W), lambda b: (b, 0, 0)),
        ),
        compiler_params=pltpu.CompilerParams(
            dimension_semantics=("parallel",),
            vmem_limit_bytes=48 * 1024 * 1024,
        ),
        cost_estimate=cost,
    )(xf, wf)
    return out.reshape(N, C, H, W)


def make_gaussian_depthwise_weight(channels: int, kernel_size: int, sigma: float,
                                   dtype=jnp.float32) -> jax.Array:
    """Deterministic per-channel filter: normalized 2-D Gaussian (uses `sigma`)."""
    ax = np.arange(kernel_size, dtype=np.float64) - (kernel_size - 1) / 2.0
    g1 = np.exp(-(ax ** 2) / (2.0 * float(sigma) ** 2))
    g2 = np.outer(g1, g1)
    g2 = g2 / g2.sum()
    w = np.broadcast_to(g2, (channels, kernel_size, kernel_size)).copy()
    return jnp.asarray(w, dtype=dtype)


def _reference(x, weight):
    """Pure-JAX reference: grouped (depthwise) conv on reflection-padded input."""
    C, K, _ = weight.shape
    pad = K // 2
    xp = jnp.pad(x, ((0, 0), (0, 0), (pad, pad), (pad, pad)), mode="reflect")
    rhs = weight[:, None, :, :]  # OIHW with I=1 (feature_group_count=C)
    return jax.lax.conv_general_dilated(
        xp.astype(jnp.float32), rhs.astype(jnp.float32),
        window_strides=(1, 1), padding="VALID",
        dimension_numbers=("NCHW", "OIHW", "NCHW"),
        feature_group_count=C,
    ).astype(x.dtype)


if __name__ == "__main__":
    # Module config (synthetic, deterministic)
    channels, kernel_size, sigma = 4, 3, 1
    N, H, W = 2, 16, 16

    key = jax.random.PRNGKey(0)
    x = jax.random.normal(key, (N, channels, H, W), dtype=jnp.float32)
    weight = make_gaussian_depthwise_weight(channels, kernel_size, sigma)

    out = jax.block_until_ready(custom_filter_layer(x, weight))
    ref = jax.block_until_ready(_reference(x, weight))

    assert out.shape == (N, channels, H, W)
    assert jnp.allclose(out, ref, atol=1e-5, rtol=1e-5)

    print("KERNEL_OK")
</pallas_src>

<mosaic_0001>
module attributes {stable_mosaic.version = 11 : i64} {
  func.func @_dwconv_kernel(%arg0: i32, %arg1: memref<4x16x16xf32, #tpu.memory_space<vmem>>, %arg2: memref<4x3x3xf32, #tpu.memory_space<vmem>>, %arg3: memref<4x16x16xf32, #tpu.memory_space<vmem>>) attributes {dimension_semantics = [#tpu.dimension_semantics<parallel>], iteration_bounds = array<i64: 2>, scalar_prefetch = 0 : i64, scratch_operands = 0 : i64, tpu.core_type = #tpu.core_type<tc>, window_params = [{transform_indices = @transform_0, window_bounds = array<i64: 4, 16, 16>}, {transform_indices = @transform_1, window_bounds = array<i64: 4, 3, 3>}, {transform_indices = @transform_2, window_bounds = array<i64: 4, 16, 16>}]} {
    %c0 = arith.constant 0 : index
    %c0_0 = arith.constant 0 : index
    %c0_1 = arith.constant 0 : index
    %0 = vector.load %arg1[%c0, %c0_0, %c0_1] : memref<4x16x16xf32, #tpu.memory_space<vmem>>, vector<4x16x16xf32>
    %c0_2 = arith.constant 0 : index
    %c0_3 = arith.constant 0 : index
    %c0_4 = arith.constant 0 : index
    %1 = vector.load %arg2[%c0_2, %c0_3, %c0_4] : memref<4x3x3xf32, #tpu.memory_space<vmem>>, vector<4x3x3xf32>
    %2 = vector.extract_strided_slice %0 {offsets = [0, 1, 0], sizes = [4, 1, 16], strides = [1, 1, 1]} : vector<4x16x16xf32> to vector<4x1x16xf32>
    %3 = vector.extract_strided_slice %0 {offsets = [0, 14, 0], sizes = [4, 1, 16], strides = [1, 1, 1]} : vector<4x16x16xf32> to vector<4x1x16xf32>
    %4 = tpu.concatenate %2, %0, %3 in 1 : vector<4x1x16xf32>, vector<4x16x16xf32>, vector<4x1x16xf32> -> vector<4x18x16xf32>
    %5 = vector.extract_strided_slice %4 {offsets = [0, 0, 1], sizes = [4, 18, 1], strides = [1, 1, 1]} : vector<4x18x16xf32> to vector<4x18x1xf32>
    %6 = vector.extract_strided_slice %4 {offsets = [0, 0, 14], sizes = [4, 18, 1], strides = [1, 1, 1]} : vector<4x18x16xf32> to vector<4x18x1xf32>
    %7 = tpu.concatenate %5, %4, %6 in 2 : vector<4x18x1xf32>, vector<4x18x16xf32>, vector<4x18x1xf32> -> vector<4x18x18xf32>
    %cst = arith.constant 0.000000e+00 : f32
    %8 = vector.broadcast %cst : f32 to vector<4x16x16xf32>
    %9 = vector.extract_strided_slice %7 {offsets = [0, 0, 0], sizes = [4, 18, 16], strides = [1, 1, 1]} : vector<4x18x18xf32> to vector<4x18x16xf32>
    %10 = vector.extract_strided_slice %1 {offsets = [0, 0, 0], sizes = [4, 1, 1], strides = [1, 1, 1]} : vector<4x3x3xf32> to vector<4x1x1xf32>
    %11 = vector.extract_strided_slice %9 {offsets = [0, 0, 0], sizes = [4, 16, 16], strides = [1, 1, 1]} : vector<4x18x16xf32> to vector<4x16x16xf32>
    %12 = vector.broadcast %10 : vector<4x1x1xf32> to vector<4x16x16xf32>
    %13 = arith.mulf %12, %11 : vector<4x16x16xf32>
    %14 = arith.addf %8, %13 : vector<4x16x16xf32>
    %15 = vector.extract_strided_slice %1 {offsets = [0, 1, 0], sizes = [4, 1, 1], strides = [1, 1, 1]} : vector<4x3x3xf32> to vector<4x1x1xf32>
    %16 = vector.extract_strided_slice %9 {offsets = [0, 1, 0], sizes = [4, 16, 16], strides = [1, 1, 1]} : vector<4x18x16xf32> to vector<4x16x16xf32>
    %17 = vector.broadcast %15 : vector<4x1x1xf32> to vector<4x16x16xf32>
    %18 = arith.mulf %17, %16 : vector<4x16x16xf32>
    %19 = arith.addf %14, %18 : vector<4x16x16xf32>
    %20 = vector.extract_strided_slice %1 {offsets = [0, 2, 0], sizes = [4, 1, 1], strides = [1, 1, 1]} : vector<4x3x3xf32> to vector<4x1x1xf32>
    %21 = vector.extract_strided_slice %9 {offsets = [0, 2, 0], sizes = [4, 16, 16], strides = [1, 1, 1]} : vector<4x18x16xf32> to vector<4x16x16xf32>
    %22 = vector.broadcast %20 : vector<4x1x1xf32> to vector<4x16x16xf32>
    %23 = arith.mulf %22, %21 : vector<4x16x16xf32>
    %24 = arith.addf %19, %23 : vector<4x16x16xf32>
    %25 = vector.extract_strided_slice %7 {offsets = [0, 0, 1], sizes = [4, 18, 16], strides = [1, 1, 1]} : vector<4x18x18xf32> to vector<4x18x16xf32>
    %26 = vector.extract_strided_slice %1 {offsets = [0, 0, 1], sizes = [4, 1, 1], strides = [1, 1, 1]} : vector<4x3x3xf32> to vector<4x1x1xf32>
    %27 = vector.extract_strided_slice %25 {offsets = [0, 0, 0], sizes = [4, 16, 16], strides = [1, 1, 1]} : vector<4x18x16xf32> to vector<4x16x16xf32>
    %28 = vector.broadcast %26 : vector<4x1x1xf32> to vector<4x16x16xf32>
    %29 = arith.mulf %28, %27 : vector<4x16x16xf32>
    %30 = arith.addf %24, %29 : vector<4x16x16xf32>
    %31 = vector.extract_strided_slice %1 {offsets = [0, 1, 1], sizes = [4, 1, 1], strides = [1, 1, 1]} : vector<4x3x3xf32> to vector<4x1x1xf32>
    %32 = vector.extract_strided_slice %25 {offsets = [0, 1, 0], sizes = [4, 16, 16], strides = [1, 1, 1]} : vector<4x18x16xf32> to vector<4x16x16xf32>
    %33 = vector.broadcast %31 : vector<4x1x1xf32> to vector<4x16x16xf32>
    %34 = arith.mulf %33, %32 : vector<4x16x16xf32>
    %35 = arith.addf %30, %34 : vector<4x16x16xf32>
    %36 = vector.extract_strided_slice %1 {offsets = [0, 2, 1], sizes = [4, 1, 1], strides = [1, 1, 1]} : vector<4x3x3xf32> to vector<4x1x1xf32>
    %37 = vector.extract_strided_slice %25 {offsets = [0, 2, 0], sizes = [4, 16, 16], strides = [1, 1, 1]} : vector<4x18x16xf32> to vector<4x16x16xf32>
    %38 = vector.broadcast %36 : vector<4x1x1xf32> to vector<4x16x16xf32>
    %39 = arith.mulf %38, %37 : vector<4x16x16xf32>
    %40 = arith.addf %35, %39 : vector<4x16x16xf32>
    %41 = vector.extract_strided_slice %7 {offsets = [0, 0, 2], sizes = [4, 18, 16], strides = [1, 1, 1]} : vector<4x18x18xf32> to vector<4x18x16xf32>
    %42 = vector.extract_strided_slice %1 {offsets = [0, 0, 2], sizes = [4, 1, 1], strides = [1, 1, 1]} : vector<4x3x3xf32> to vector<4x1x1xf32>
    %43 = vector.extract_strided_slice %41 {offsets = [0, 0, 0], sizes = [4, 16, 16], strides = [1, 1, 1]} : vector<4x18x16xf32> to vector<4x16x16xf32>
    %44 = vector.broadcast %42 : vector<4x1x1xf32> to vector<4x16x16xf32>
    %45 = arith.mulf %44, %43 : vector<4x16x16xf32>
    %46 = arith.addf %40, %45 : vector<4x16x16xf32>
    %47 = vector.extract_strided_slice %1 {offsets = [0, 1, 2], sizes = [4, 1, 1], strides = [1, 1, 1]} : vector<4x3x3xf32> to vector<4x1x1xf32>
    %48 = vector.extract_strided_slice %41 {offsets = [0, 1, 0], sizes = [4, 16, 16], strides = [1, 1, 1]} : vector<4x18x16xf32> to vector<4x16x16xf32>
    %49 = vector.broadcast %47 : vector<4x1x1xf32> to vector<4x16x16xf32>
    %50 = arith.mulf %49, %48 : vector<4x16x16xf32>
    %51 = arith.addf %46, %50 : vector<4x16x16xf32>
    %52 = vector.extract_strided_slice %1 {offsets = [0, 2, 2], sizes = [4, 1, 1], strides = [1, 1, 1]} : vector<4x3x3xf32> to vector<4x1x1xf32>
    %53 = vector.extract_strided_slice %41 {offsets = [0, 2, 0], sizes = [4, 16, 16], strides = [1, 1, 1]} : vector<4x18x16xf32> to vector<4x16x16xf32>
    %54 = vector.broadcast %52 : vector<4x1x1xf32> to vector<4x16x16xf32>
    %55 = arith.mulf %54, %53 : vector<4x16x16xf32>
    %56 = arith.addf %51, %55 : vector<4x16x16xf32>
    %c0_5 = arith.constant 0 : index
    %c0_6 = arith.constant 0 : index
    %c0_7 = arith.constant 0 : index
    %57 = vector.load %arg3[%c0_5, %c0_6, %c0_7] : memref<4x16x16xf32, #tpu.memory_space<vmem>>, vector<4x16x16xf32>
    tpu.vector_store %arg3[%c0_5, %c0_6, %c0_7], %56 {strides = array<i32>} : memref<4x16x16xf32, #tpu.memory_space<vmem>>, vector<4x16x16xf32>,
    return
  }
  func.func @transform_0(%arg0: i32) -> (i32, i32, i32) {
    %c0_i32 = arith.constant 0 : i32
    %c0_i32_0 = arith.constant 0 : i32
    %c0_i32_1 = arith.constant 0 : i32
    return %arg0, %c0_i32, %c0_i32_0 : i32, i32, i32
  }
  func.func @transform_1(%arg0: i32) -> (i32, i32, i32) {
    %c0_i32 = arith.constant 0 : i32
    %c0_i32_0 = arith.constant 0 : i32
    %c0_i32_1 = arith.constant 0 : i32
    return %arg0, %c0_i32, %c0_i32_0 : i32, i32, i32
  }
  func.func @transform_2(%arg0: i32) -> (i32, i32, i32) {
    %c0_i32 = arith.constant 0 : i32
    %c0_i32_0 = arith.constant 0 : i32
    %c0_i32_1 = arith.constant 0 : i32
    return %arg0, %c0_i32, %c0_i32_0 : i32, i32, i32
  }
}

</mosaic_0001>

<bundles_post_ra>
// kernel: tpu_custom_call.1
= control target key start
LH: loop header
LB: loop body
LE: loop exit
PB: predicated region body
PF: predicated region fallthrough
CT: control target
= control target key end

     0   :  { %7 = vsyncpa [#allocation3], 0  ;;  %s2487_s0 = inlined_call_operand.hbm [shape: f32[8,16,16], index: 0, kind: input, shape index: {}]   ;;  %s2488_s1 = inlined_call_operand.vmem [shape: f32[8,3,3], index: 1, kind: input, shape index: {}]   ;;  %s2489_s2 = inlined_call_operand.hbm [shape: f32[8,16,16], index: 2, kind: output, shape index: {}]  }
   0x1   :  { %9 = vsyncpa [#allocation3 + $0x1], 0 }
   0x2   :  { %10 = vsyncpa [#allocation4], 0 }
   0x3   :  { %12 = vsyncpa [#allocation4 + $0x1], 0  ;;  %s1480_s9 = smov 0   ;;  %s1482_s10 = smov 0  }
   0x4   :  { %s1484_s11 = smov 0   ;;  %s1486_s12 = smov 0  }
   0x5 LB: > { %s1501_s13 = sadd.s32 4294967295, %s1453_s12   ;;  %s1209_s14 = sadd.s32 4294967294, %s1453_s12   ;;  %s1453_s12 = sphi %s1486_s12, %s2555_s12   ;;  %s1449_s11 = sphi %s1484_s11, %s2554_s11   ;;  %s1445_s10 = sphi %s1482_s10, %s2553_s10   ;;  %s1441_s9 = sphi %s1480_s9, %s2552_s9  }
   0x6   : > { %s1505_s15 = sadd.s32 1, %s1453_s12   ;;  %s25_s16 = sadd.s32 1, %s1449_s11 }
   0x7   : > { %s22_s17 = ssub.s32 %s1453_s12, %s1505_s15  ;;  %p32_p0 = scmp.ne.s32.totalorder %s1449_s11, %s1445_s10 }
   0x8   : > { %p23_p1 = scmp.eq.s32.totalorder %s22_s17, 0  ;;  %p33_p2 = scmp.eq.s32.totalorder %s1453_s12, 0 }
   0x9   : > { %p38_p3 = scmp.ne.s32.totalorder %s1445_s10, %s1441_s9  ;;  %p39_p4 = scmp.eq.s32.totalorder %s1501_s13, 0 }
   0xa   : > { %s1517_s18 = scalar_select %p23_p1, %s1449_s11, %s25_s16  }
   0xb   : > { %p1519_p5 = por %p33_p2, %p32_p0  ;;  %p1523_p6 = por %p39_p4, %p38_p3 }
   0xc   : > { %p88_p7 = scmp.eq.s32.totalorder %s1501_s13, 1  ;;  %p94_p8 = scmp.eq.s32.totalorder %s1209_s14, 1 }
   0xd   : > { %p1315_p10 = scmp.lt.s32.totalorder %s1453_s12, 2  ;;  %s114_s23 = sand.u32 1, %s1449_s11  }
   0xe   : > { %p1530_p11 = por %p88_p7, %p32_p0  ;;  %p1534_p12 = por %p94_p8, %p38_p3 }
   0xf   : > { %s1228_s24 = sshll.u32 %s1453_s12, 10  ;;  %s1212_s25 = sshll.u32 %s114_s23, 6 }
  0x10   : > { %s2509_s21 = scalar_select %p1530_p11, 1, 0 }
  0x11   : > { %s2510_s22 = scalar_select %p1534_p12, 1, 0 }
  0x12   : > { %s1543_s28 = scalar_lea.hbm %s2487_s0, %s1228_s24  ;;  %s118_s29 = scalar_lea.vmem [#allocation2], %s1212_s25 }
  0x13   : > { %s126_s30 = sshll.u32 %s118_s29, 4  ;;  %p1547_p13 = pnand %p1315_p10, %p1519_p5  ;;  %s1551_s30 = int_to_ptr.vmem [resolvable:$true] %s126_s30 }
  0x14   : > { %s1553_s4 = scalar_lea.sflag [#allocation3], %s114_s23  ;;  %s1357_s5 = scalar_lea.hbm %s1543_s28, 1024 }
  0x15   : > { %p1358_p0 = scmp.ne.s32.totalorder %s1543_s28, %s1357_s5  ;;  %p1359_p1 = pneg %p1547_p13 }
  0x16   : > { %s1362_s8 = scalar_lea.hbm %s2487_s0, 2048  ;;  %p1363_p4 = scmp.lt.u32.totalorder %s1543_s28, %s2487_s0 }
  0x17   : > { %p1360_p2 = pnand %p1359_p1, %p1358_p0  ;;  %p1364_p5 = scmp.lt.u32.totalorder %s1362_s8, %s1357_s5 }
  0x18   : > { %p1366_p8 = scmp.lt.u32.totalorder %s1357_s5, %s1543_s28 }
  0x19   : > { %p1361_p3 = pneg %p1360_p2  ;;  %p1365_p7 = por %p1364_p5, %p1363_p4 }
  0x1b   : > { %p1367_p10 = por %p1366_p8, %p1365_p7 }
  0x1d   : > { %p1368_p9 = pnand %p1367_p10, %p1361_p3 }
  0x1f   : > { %1371 = shalt.err (!%p1368_p9)
}
  0x20   : > { %s1372_s17 = scalar_lea.vmem %s1551_s30, 1024  ;;  %s1455_s19 = smov [#allocation2]  }
  0x21   : > { %p1373_p0 = scmp.ne.s32.totalorder %s1551_s30, %s1372_s17  ;;  %s1377_s23 = sshll.u32 %s1455_s19, 4  ;;  %s1378_s23 = int_to_ptr.vmem [resolvable:$false] %s1377_s23 }
  0x22   : > { %s1379_s24 = scalar_lea.vmem %s1378_s23, 2048  ;;  %p1380_p11 = scmp.lt.s32.totalorder %s1551_s30, %s1378_s23 }
  0x23   : > { %p1375_p2 = pnand %p1373_p0, %p1359_p1  ;;  %p1381_p4 = scmp.lt.s32.totalorder %s1379_s24, %s1372_s17 }
  0x25   : > { %p1376_p12 = pneg %p1375_p2  ;;  %p1382_p5 = por %p1381_p4, %p1380_p11 }
  0x27   : > { %p1383_p7 = pnand %p1382_p5, %p1376_p12 }
  0x29   : > { %1386 = shalt.err (!%p1383_p7)
}
  0x2a   : > { %s1456_s25 = smov 128   ;;  %s1457_s26 = smov 8  }
  0x2b   : > { %1310 = dma.hbm_to_vmem [thread:$0]  (!%p1547_p13), %s1543_s28, 1024, %s1551_s30, %s1553_s4, %s1456_s25, %s1456_s25, %s1457_s26  }
  0x2c   : > { %p1216_p9 = scmp.ge.s32.totalorder %s1453_s12, 1  ;;  %p143_p1 = scmp.lt.s32.totalorder %s1453_s12, 3 }
  0x2e   : > { %p144_p3 = pnand %p1216_p9, %p143_p1 }
  0x30   : > { %147 = sbr.rel (%p144_p3) target bundleno = 512 (0x200), region = 28 }
  0x37   : > { %s1584_s27 = sand.u32 1, %s1445_s10  }
  0x38   : > { %s2491_s29 = sshll.u32 %s1584_s27, 6  ;;  %s150_s5 = scalar_lea.sflag [#allocation3], %s1584_s27 }
  0x39   : > { %s1590_s6 = scalar_lea.vmem [#allocation2], %s2491_s29 }
  0x3a   : > { %1432 = dma.done.wait (%p1523_p6), %s150_s5, 1024  }
  0x3b   : > { %1434 = vsyncadd (%p1523_p6), %s150_s5, 4294966272  ;;  %s1219_s28 = sshll.u32 %s1501_s13, 2  ;;  %v188_v0 = vld [vmem:[%s1590_s6 + $0x8] sm:$0xff]  ;;  %vm215_vm0 = vcmask 1040384   ;;  %v187_v1 = vld [vmem:[%s1590_s6] sm:$0xff]  ;;  %s2494_s7 = smov 127  }
  0x3c   : > { %p181_p11 = scmp.lt.s32.totalorder %s1219_s28, 7  ;;  %v189_v2 = vld [vmem:[%s1590_s6 + $0x10] sm:$0xff]  ;;  %v217_v3 = vrot.slane %v188_v0, 7  ;;  %v236_v4 = vrot.slane %v188_v0, 5  ;;  %v203_v5 = vrot.slane %v187_v1, 1  ;;  %v216_v6 = vrot.slane %v187_v1, 7 }
  0x3d   : > { %v190_v7 = vld [vmem:[%s1590_s6 + $0x18] sm:$0xff]  ;;  %v204_v8 = vrot.slane %v189_v2, 1  ;;  %v219_v9 = vrot.slane %v189_v2, 7  ;;  %v191_v17 = vld [vmem:[%s1590_s6 + $0x20] sm:$0xff]  ;;  %v192_v19 = vld [vmem:[%s1590_s6 + $0x28] sm:$0xff]  ;;  %s1459_s8 = smov 1  }
  0x3e   : > { %s2557_s28 = smov (!%p181_p11, %s1219_s28), 7  ;;  %v1605_v10 = vsel %vm215_vm0, %v217_v3, %v236_v4  ;;  %v1608_v11 = vsel %vm215_vm0, %v203_v5, %v216_v6  ;;  %v220_v12 = vrot.slane %v190_v7, 7  ;;  %v237_v13 = vrot.slane %v190_v7, 5  ;;  %v193_v29 = vld [vmem:[%s1590_s6 + $0x30] sm:$0xff]  ;;  %v194_v40 = vld [vmem:[%s1590_s6 + $0x38] sm:$0xff]  ;;  %s2492_s14 = smov 126  }
  0x3f   : > { %s1220_s30 = sshll.u32 %s2557_s28, 2  ;;  %264 = vrot.lane.b32.xlu1 %v1605_v10, %s2494_s7  ;;  %260 = vrot.lane.b32.xlu0 %v1608_v11, %s2494_s7  ;;  %v1617_v15 = vsel %vm215_vm0, %v204_v8, %v219_v9  ;;  %v1620_v16 = vsel %vm215_vm0, %v216_v6, %v217_v3  ;;  %v222_v24 = vrot.slane %v191_v17, 7  ;;  %v223_v27 = vrot.slane %v192_v19, 7  ;;  %s1461_s16 = smov 3  }
  0x40   : > { %s184_s4 = scalar_lea.vmem %s2488_s1, %s1220_s30  ;;  %v1641_v23 = vsel %vm215_vm0, %v220_v12, %v237_v13  ;;  %v1648_v26 = vsel %vm215_vm0, %v219_v9, %v220_v12  ;;  %v205_v28 = vrot.slane %v191_v17, 1  ;;  %v206_v33 = vrot.slane %v193_v29, 1  ;;  %p2549_p12 = scmp.ne.s32.totalorder %s2509_s21, 0 }
  0x41   : > { %v1614_v14 = vld [vmem:[%s184_s4] sm:$0x7]  ;;  %v1623_v18 = vld [vmem:[%s184_s4 + $0x4] sm:$0x7]  ;;  %v1627_v20 = vld [vmem:[%s184_s4 + $0x8] sm:$0x7]  ;;  %v1662_v36 = vsel %vm215_vm0, %v222_v24, %v223_v27 }
  0x42   : > { %1231 = vpush %v1614_v14  ;;  %v1631_v21 = vrot.slane %v1614_v14, 1  ;;  %v1633_v22 = vld [vmem:[%s184_s4 + $0xc] sm:$0x7]  ;;  %v1644_v25 = vrot.slane %v1623_v18, 1  ;;  %v428_v30 = vrot.slane %v1627_v20, 1  ;;  %v503_v32 = vrot.slane %v1614_v14, 2 }
  0x43   : > { %1233 = vpush %v1623_v18  ;;  %266 = vrot.lane.b32.xlu1 %v1617_v15, %s2494_s7  ;;  %262 = vrot.lane.b32.xlu0 %v1620_v16, %s2494_s7  ;;  %v429_v31 = vrot.slane %v1633_v22, 1  ;;  %v225_v34 = vrot.slane %v193_v29, 7  ;;  %v504_v35 = vrot.slane %v1623_v18, 2  ;;  %v1665_v37 = vsel %vm215_vm0, %v205_v28, %v222_v24 }
  0x44   : > { %1235 = vpush %v1627_v20  ;;  %v238_v38 = vrot.slane %v192_v19, 5  ;;  %v505_v39 = vrot.slane %v1627_v20, 2  ;;  %v506_v41 = vrot.slane %v1633_v22, 2  ;;  %v226_v44 = vrot.slane %v194_v40, 7 }
  0x45   : > { %1237 = vpush %v1633_v22  ;;  %v247_v42 = vsel %vm215_vm0, %v206_v33, %v225_v34  ;;  %v239_v45 = vrot.slane %v194_v40, 5  ;;  %vm368_vm1 = vcmask 7168   ;;  %vm381_vm2 = vcmask 138240  }
  0x46   : > { %1239 = vpush %v1631_v21  ;;  %v250_v43 = vsel %vm215_vm0, %v223_v27, %v238_v38  ;;  %v227_v47 = vsel %vm215_vm0, %v225_v34, %v226_v44  ;;  %vm466_vm3 = vcmask 1046528   ;;  %vm543_vm4 = vcmask 1045504  }
  0x47   : > { %1241 = vpush %v1644_v25  ;;  %270 = vrot.lane.b32.xlu1 %v1641_v23, %s2494_s7  ;;  %268 = vrot.lane.b32.xlu0 %v1648_v26, %s2494_s7  ;;  %v251_v46 = vsel %vm215_vm0, %v226_v44, %v239_v45  ;;  %vm1100_vm5 = vcmask 130048  }
  0x48   : > { %1243 = vpush %v428_v30 }
  0x49   : > { %1245 = vpush %v429_v31 }
  0x4a   : > { %1247 = vpush %v503_v32 }
  0x4b   : > { %1249 = vpush %v504_v35  ;;  %274 = vrot.lane.b32.xlu1 %v1662_v36, %s2494_s7  ;;  %272 = vrot.lane.b32.xlu0 %v1665_v37, %s2494_s7 }
  0x4c   : > { %1251 = vpush %v505_v39 }
  0x4d   : > { %1253 = vpush %v506_v41 }
  0x4f   : > { %278 = vrot.lane.b32.xlu1 %v247_v42, %s2494_s7  ;;  %276 = vrot.lane.b32.xlu0 %v250_v43, %s2494_s7 }
  0x53   : > { %282 = vrot.lane.b32.xlu1 %v251_v46, %s2494_s7  ;;  %280 = vrot.lane.b32.xlu0 %v227_v47, %s2494_s7 }
  0x57   : > { %298 = vrot.lane.b32.xlu1 %v1620_v16, %s1459_s8  ;;  %296 = vrot.lane.b32.xlu0 %v1608_v11, %s1459_s8 }
  0x5b   : > { %302 = vrot.lane.b32.xlu1 %v1617_v15, %s1459_s8  ;;  %300 = vrot.lane.b32.xlu0 %v1605_v10, %s1459_s8 }
  0x5f   : > { %580 = vrot.lane.b32.xlu1 %v1614_v14, %s2494_s7  ;;  %304 = vrot.lane.b32.xlu0 %v1648_v26, %s1459_s8 }
  0x63   : > { %584 = vrot.lane.b32.xlu1 %v1627_v20, %s2494_s7  ;;  %582 = vrot.lane.b32.xlu0 %v1623_v18, %s2494_s7 }
  0x67   : > { %648 = vrot.lane.b32.xlu1 %v1631_v21, %s2494_s7  ;;  %586 = vrot.lane.b32.xlu0 %v1633_v22, %s2494_s7 }
  0x6b   : > { %652 = vrot.lane.b32.xlu1 %v428_v30, %s2494_s7  ;;  %650 = vrot.lane.b32.xlu0 %v1644_v25, %s2494_s7 }
  0x6f   : > { %744 = vrot.lane.b32.xlu1 %v503_v32, %s2494_s7  ;;  %654 = vrot.lane.b32.xlu0 %v429_v31, %s2494_s7 }
  0x73   : > { %748 = vrot.lane.b32.xlu1 %v505_v39, %s2494_s7  ;;  %746 = vrot.lane.b32.xlu0 %v504_v35, %s2494_s7  ;;  %s1780_s17 = spop %1231 }
  0x74   : > { %s1782_s19 = spop %1233 }
  0x75   : > { %s1784_s23 = spop %1235 }
  0x76   : > { %s1786_s24 = spop %1237 }
  0x77   : > { %840 = vrot.lane.b32.xlu1 %v1614_v14, %s2492_s14  ;;  %750 = vrot.lane.b32.xlu0 %v506_v41, %s2494_s7  ;;  %s1788_s25 = spop %1239 }
  0x78   : > { %s1790_s26 = spop %1241  ;;  %v1824_v33 = vstv %s1788_s25 }
  0x79   : > { %s1792_s5 = spop %1243 }
  0x7a   : > { %s1794_s6 = spop %1245 }
  0x7b   : > { %844 = vrot.lane.b32.xlu1 %v1627_v20, %s2492_s14  ;;  %842 = vrot.lane.b32.xlu0 %v1623_v18, %s2492_s14  ;;  %s1248_s28 = spop %1247 }
  0x7c   : > { %s1798_s30 = spop %1249  ;;  %v1826_v34 = vstv %s1248_s28 }
  0x7d   : > { %s1800_s20 = spop %1251 }
  0x7e   : > { %s1806_s3 = spop %1253 }
  0x7f   : > { %908 = vrot.lane.b32.xlu1 %v1631_v21, %s2492_s14  ;;  %846 = vrot.lane.b32.xlu0 %v1633_v22, %s2492_s14 }
  0x83   : > { %912 = vrot.lane.b32.xlu1 %v428_v30, %s2492_s14  ;;  %910 = vrot.lane.b32.xlu0 %v1644_v25, %s2492_s14 }
  0x87   : > { %1004 = vrot.lane.b32.xlu1 %v503_v32, %s2492_s14  ;;  %914 = vrot.lane.b32.xlu0 %v429_v31, %s2492_s14  ;;  %v396_v32 = vstv %s1780_s17 }
  0x8b   : > { %1008 = vrot.lane.b32.xlu1 %v505_v39, %s2492_s14  ;;  %1006 = vrot.lane.b32.xlu0 %v504_v35, %s2492_s14 }
  0x8f   : > { %306 = vrot.lane.b32.xlu1 %v1641_v23, %s1459_s8  ;;  %1010 = vrot.lane.b32.xlu0 %v506_v41, %s2492_s14 }
  0x93   : > { %310 = vrot.lane.b32.xlu1 %v1662_v36, %s1459_s8  ;;  %308 = vrot.lane.b32.xlu0 %v1665_v37, %s1459_s8 }
  0x97   : > { %314 = vrot.lane.b32.xlu1 %v247_v42, %s1459_s8  ;;  %312 = vrot.lane.b32.xlu0 %v250_v43, %s1459_s8 }
  0x9b   : > { %318 = vrot.lane.b32.xlu1 %v251_v46, %s1459_s8  ;;  %316 = vrot.lane.b32.xlu0 %v227_v47, %s1459_s8 }
  0x9f   : > { %334 = vrot.lane.b32.xlu1 %v1620_v16, %s1461_s16  ;;  %332 = vrot.lane.b32.xlu0 %v1608_v11, %s1461_s16 }
  0xa3   : > { %338 = vrot.lane.b32.xlu1 %v1617_v15, %s1461_s16  ;;  %336 = vrot.lane.b32.xlu0 %v1605_v10, %s1461_s16 }
  0xa7   : > { %342 = vrot.lane.b32.xlu1 %v1641_v23, %s1461_s16  ;;  %340 = vrot.lane.b32.xlu0 %v1648_v26, %s1461_s16 }
  0xab   : > { %346 = vrot.lane.b32.xlu1 %v1662_v36, %s1461_s16  ;;  %344 = vrot.lane.b32.xlu0 %v1665_v37, %s1461_s16 }
  0xaf   : > { %350 = vrot.lane.b32.xlu1 %v247_v42, %s1461_s16  ;;  %348 = vrot.lane.b32.xlu0 %v250_v43, %s1461_s16 }
  0xb1   : > { %v1746_v48 = vpop.permute.xlu1 %264  ;;  %v1748_v49 = vpop.permute.xlu0 %260 }
  0xb3   : > { %354 = vrot.lane.b32.xlu1 %v251_v46, %s1461_s16  ;;  %352 = vrot.lane.b32.xlu0 %v227_v47, %s1461_s16 }
  0xb5   : > { %v1750_v50 = vpop.permute.xlu1 %266  ;;  %v1752_v51 = vpop.permute.xlu0 %262 }
  0xb9   : > { %v1754_v52 = vpop.permute.xlu1 %270  ;;  %v1756_v53 = vpop.permute.xlu0 %268 }
  0xbd   : > { %v1758_v54 = vpop.permute.xlu1 %274  ;;  %v1760_v55 = vpop.permute.xlu0 %272 }
  0xc1   : > { %v1762_v56 = vpop.permute.xlu1 %278  ;;  %v1764_v57 = vpop.permute.xlu0 %276 }
  0xc5   : > { %v1766_v58 = vpop.permute.xlu1 %282  ;;  %v1768_v59 = vpop.permute.xlu0 %280 }
  0xc9   : > { %v1770_v60 = vpop.permute.xlu1 %298  ;;  %v1772_v61 = vpop.permute.xlu0 %296 }
  0xca   : > { %v370_v35 = vsel %vm368_vm1, %v1752_v51, %v1770_v60  ;;  %v369_v36 = vsel %vm368_vm1, %v1748_v49, %v1772_v61 }
  0xcd   : > { %v1774_v62 = vpop.permute.xlu1 %302  ;;  %v1776_v63 = vpop.permute.xlu0 %300 }
  0xce   : > { %v372_v37 = vsel %vm368_vm1, %v1750_v50, %v1774_v62  ;;  %v371_v38 = vsel %vm368_vm1, %v1746_v48, %v1776_v63 }
  0xd1   : > { %v581_v0 = vpop.permute.xlu1 %580  ;;  %v1778_v1 = vpop.permute.xlu0 %304 }
  0xd2   : > { %1255 = vpush %v581_v0 }
  0xd5   : > { %v585_v2 = vpop.permute.xlu1 %584  ;;  %v583_v3 = vpop.permute.xlu0 %582 }
  0xd6   : > { %1257 = vpush %v583_v3 }
  0xd7   : > { %1259 = vpush %v585_v2 }
  0xd9   : > { %v649_v4 = vpop.permute.xlu1 %648  ;;  %v587_v5 = vpop.permute.xlu0 %586 }
  0xda   : > { %1261 = vpush %v587_v5 }
  0xdb   : > { %1263 = vpush %v649_v4 }
  0xdd   : > { %v653_v6 = vpop.permute.xlu1 %652  ;;  %v651_v7 = vpop.permute.xlu0 %650 }
  0xde   : > { %1265 = vpush %v651_v7 }
  0xdf   : > { %1267 = vpush %v653_v6 }
  0xe1   : > { %v745_v8 = vpop.permute.xlu1 %744  ;;  %v655_v9 = vpop.permute.xlu0 %654 }
  0xe2   : > { %1269 = vpush %v655_v9 }
  0xe3   : > { %1271 = vpush %v745_v8 }
  0xe5   : > { %v749_v10 = vpop.permute.xlu1 %748  ;;  %v747_v11 = vpop.permute.xlu0 %746 }
  0xe6   : > { %1273 = vpush %v747_v11 }
  0xe7   : > { %1275 = vpush %v749_v10 }
  0xe9   : > { %v841_v12 = vpop.permute.xlu1 %840  ;;  %v751_v13 = vpop.permute.xlu0 %750 }
  0xea   : > { %1277 = vpush %v751_v13 }
  0xeb   : > { %1279 = vpush %v841_v12 }
  0xed   : > { %v845_v14 = vpop.permute.xlu1 %844  ;;  %v843_v15 = vpop.permute.xlu0 %842 }
  0xee   : > { %1281 = vpush %v843_v15  ;;  %v373_v15 = vsel %vm368_vm1, %v1756_v53, %v1778_v1 }
  0xef   : > { %1283 = vpush %v845_v14 }
  0xf1   : > { %v909_v16 = vpop.permute.xlu1 %908  ;;  %v847_v17 = vpop.permute.xlu0 %846 }
  0xf2   : > { %1285 = vpush %v847_v17 }
  0xf3   : > { %1287 = vpush %v909_v16 }
  0xf5   : > { %v913_v18 = vpop.permute.xlu1 %912  ;;  %v911_v19 = vpop.permute.xlu0 %910 }
  0xf6   : > { %1289 = vpush %v911_v19 }
  0xf7   : > { %1291 = vpush %v913_v18 }
  0xf9   : > { %v1005_v20 = vpop.permute.xlu1 %1004  ;;  %v915_v21 = vpop.permute.xlu0 %914 }
  0xfa   : > { %1293 = vpush %v915_v21 }
  0xfb   : > { %1295 = vpush %v1005_v20 }
  0xfd   : > { %v1009_v22 = vpop.permute.xlu1 %1008  ;;  %v1007_v23 = vpop.permute.xlu0 %1006 }
  0xfe   : > { %1297 = vpush %v1007_v23 }
  0xff   : > { %1299 = vpush %v1009_v22 }
 0x101   : > { %v1796_v24 = vpop.permute.xlu1 %306  ;;  %v1011_v25 = vpop.permute.xlu0 %1010 }
 0x102   : > { %1301 = vpush %v1011_v25 }
 0x103   : > { %s1256_s4 = spop %1255 }
 0x104   : > { %v589_v41 = vstv %s1256_s4 }
 0x105   : > { %v1802_v26 = vpop.permute.xlu1 %310  ;;  %v1804_v27 = vpop.permute.xlu0 %308 }
 0x107   : > { %s1812_s8 = spop %1257 }
 0x108   : > { %s1814_s16 = spop %1259  ;;  %v592_v49 = vstv %s1812_s8 }
 0x109   : > { %v1808_v28 = vpop.permute.xlu1 %314  ;;  %v1810_v29 = vpop.permute.xlu0 %312 }
 0x10b   : > { %s1816_s29 = spop %1261 }
 0x10c   : > { %s1264_s14 = spop %1263 }
 0x10d   : > { %v1818_v30 = vpop.permute.xlu1 %318  ;;  %v1820_v31 = vpop.permute.xlu0 %316  ;;  %v657_v42 = vstv %s1264_s14  ;;  %s2512_s14 = smov 127  }
 0x10f   : > { %s1828_s7 = spop %1265 }
 0x110   : > { %s1842_s17 = spop %1267  ;;  %v1887_v11 = vstv %s1828_s7 }
 0x111   : > { %v335_v39 = vpop.permute.xlu1 %334  ;;  %v333_v40 = vpop.permute.xlu0 %332 }
 0x112   : > { %v1845_v43 = vsel %vm381_vm2, %v370_v35, %v335_v39  ;;  %v1848_v44 = vsel %vm381_vm2, %v369_v36, %v333_v40 }
 0x113   : > { %s1850_s25 = spop %1269  ;;  %v601_v45 = vmul.f32 %v589_v41, %v1845_v43  ;;  %v600_v46 = vmul.f32 %v589_v41, %v1848_v44  ;;  %v668_v47 = vmul.f32 %v657_v42, %v1848_v44  ;;  %v669_v48 = vmul.f32 %v657_v42, %v1845_v43 }
 0x114   : > { %s1272_s28 = spop %1271  ;;  %v1858_v50 = vmul.f32 %v396_v32, %v1845_v43  ;;  %v1862_v51 = vmul.f32 %v1824_v33, %v1845_v43  ;;  %v1866_v60 = vmul.f32 %v1826_v34, %v1845_v43  ;;  %v1871_v3 = vmul.f32 %v396_v32, %v1848_v44 }
 0x115   : > { %v753_v61 = vstv %s1272_s28  ;;  %v339_v62 = vpop.permute.xlu1 %338  ;;  %618 = vrot.lane.b32.xlu1 %v601_v45, %s2512_s14  ;;  %616 = vrot.lane.b32.xlu0 %v600_v46, %s2512_s14  ;;  %v337_v63 = vpop.permute.xlu0 %336  ;;  %v692_v0 = vrot.slane %v668_v47, 1  ;;  %v693_v2 = vrot.slane %v669_v48, 1  ;;  %v376_v32 = vsel %vm368_vm1, %v1758_v54, %v1802_v26 }
 0x116   : > { %v764_v4 = vmul.f32 %v753_v61, %v1848_v44  ;;  %v765_v5 = vmul.f32 %v753_v61, %v1845_v43  ;;  %v1876_v6 = vsel %vm381_vm2, %v372_v37, %v339_v62  ;;  %v1879_v7 = vsel %vm381_vm2, %v371_v38, %v337_v63 }
 0x117   : > { %v602_v8 = vmul.f32 %v592_v49, %v1876_v6  ;;  %v1883_v9 = vsel %vm466_vm3, %v692_v0, %v693_v2  ;;  %v670_v10 = vmul.f32 %v657_v42, %v1879_v7  ;;  %s1274_s4 = spop %1273  ;;  %v766_v14 = vmul.f32 %v753_v61, %v1879_v7 }
 0x118   : > { %v788_v12 = vrot.slane %v764_v4, 2  ;;  %v789_v13 = vrot.slane %v765_v5, 2  ;;  %v671_v18 = vmul.f32 %v1887_v11, %v1876_v6  ;;  %v1902_v23 = vstv %s1274_s4  ;;  %s1925_s7 = spop %1275 }
 0x119   : > { %v343_v16 = vpop.permute.xlu1 %342  ;;  %620 = vrot.lane.b32.xlu0 %v602_v8, %s2512_s14  ;;  %v341_v17 = vpop.permute.xlu0 %340  ;;  %v695_v19 = vrot.slane %v670_v10, 1  ;;  %v791_v22 = vrot.slane %v766_v14, 2  ;;  %v375_v37 = vsel %vm368_vm1, %v1760_v55, %v1804_v27  ;;  %v1931_v26 = vmul.f32 %v1824_v33, %v1879_v7 }
 0x11a   : > { %v1897_v20 = vsel %vm381_vm2, %v373_v15, %v341_v17  ;;  %v1900_v21 = vsel %vm543_vm4, %v788_v12, %v789_v13  ;;  %v697_v40 = vrot.slane %v671_v18, 1  ;;  %v595_v41 = vstv %s1814_s16 }
 0x11b   : > { %v603_v53 = vmul.f32 %v592_v49, %v1897_v20  ;;  %v1907_v1 = vmul.f32 %v1887_v11, %v1897_v20  ;;  %v1910_v25 = vsel %vm466_vm3, %v693_v2, %v695_v19  ;;  %v1917_v35 = vmul.f32 %v1902_v23, %v1897_v20  ;;  %s1942_s8 = spop %1277 }
 0x11c   : > { %v1920_v36 = vsel %vm543_vm4, %v789_v13, %v791_v22  ;;  %v767_v42 = vmul.f32 %v1902_v23, %v1876_v6  ;;  %v378_v49 = vsel %vm368_vm1, %v1762_v56, %v1808_v28  ;;  %s1955_s16 = spop %1279  ;;  %v598_v63 = vstv %s1816_s29 }
 0x11d   : > { %2513 = vst [vmem:[#allocation8_spill] sm:$0xff] %v1917_v35  ;;  %2514 = vst [vmem:[#allocation9_spill] sm:$0xff] %v1920_v36  ;;  %v347_v38 = vpop.permute.xlu1 %346  ;;  %622 = vrot.lane.b32.xlu1 %v603_v53, %s2512_s14  ;;  %v345_v39 = vpop.permute.xlu0 %344  ;;  %v2497_v54 = vrot.slane %v1907_v1, 1  ;;  %v2496_v48 = vrot.slane %v1917_v35, 2  ;;  %v374_v2 = vsel %vm368_vm1, %v1754_v52, %v1796_v24  ;;  %v849_v4 = vstv %s1955_s16 }
 0x11e   : > { %v1937_v55 = vsel %vm381_vm2, %v376_v32, %v347_v38  ;;  %v1940_v27 = vsel %vm381_vm2, %v375_v37, %v345_v39  ;;  %v793_v0 = vrot.slane %v767_v42, 2  ;;  %v1981_v13 = vsel %vm381_vm2, %v374_v2, %v343_v16 }
 0x11f   : > { %2515 = vst [vmem:[#allocation10_spill] sm:$0xff] %v1940_v27  ;;  %v605_v45 = vmul.f32 %v595_v41, %v1937_v55  ;;  %v604_v46 = vmul.f32 %v595_v41, %v1940_v27  ;;  %v1949_v47 = vsel %vm466_vm3, %v697_v40, %v2497_v54  ;;  %s1960_s28 = spop %1281  ;;  %v1987_v24 = vstv %s1790_s26 }
 0x120   : > { %s1970_s4 = spop %1283  ;;  %v1975_v5 = vsel %vm543_vm4, %v793_v0, %v2496_v48  ;;  %v1990_v14 = vstv %s1792_s5  ;;  %v1993_v15 = vstv %s1794_s6  ;;  %v379_v17 = vsel %vm368_vm1, %v1768_v59, %v1820_v31  ;;  %s2518_s5 = smov 126  }
 0x121   : > { %v351_v61 = vpop.permute.xlu1 %350  ;;  %626 = vrot.lane.b32.xlu1 %v605_v45, %s2512_s14  ;;  %624 = vrot.lane.b32.xlu0 %v604_v46, %s2512_s14  ;;  %v349_v62 = vpop.permute.xlu0 %348  ;;  %2516 = vst [vmem:[#allocation11_spill] sm:$0xff] %v1975_v5  ;;  %2517 = vst [vmem:[#allocation12_spill] sm:$0xff] %v1993_v15  ;;  %v1999_v16 = vstv %s1798_s30  ;;  %v2002_v18 = vstv %s1800_s20  ;;  %v860_v19 = vmul.f32 %v849_v4, %v1848_v44 }
 0x122   : > { %v1963_v56 = vsel %vm381_vm2, %v378_v49, %v351_v61  ;;  %v377_v53 = vsel %vm368_vm1, %v1764_v57, %v1810_v29  ;;  %v663_v32 = vstv %s1842_s17  ;;  %v852_v37 = vstv %s1960_s28 }
 0x123   : > { %v606_v28 = vmul.f32 %v598_v63, %v1963_v56  ;;  %s1983_s29 = spop %1285  ;;  %v2017_v59 = vmul.f32 %v1887_v11, %v1981_v13  ;;  %v380_v31 = vsel %vm368_vm1, %v1766_v58, %v1818_v30  ;;  %v666_v38 = vstv %s1850_s25 }
 0x124   : > { %s1288_s16 = spop %1287  ;;  %v2024_v39 = vstv %s1925_s7  ;;  %v2028_v57 = vmul.f32 %v663_v32, %v1940_v27  ;;  %v855_v29 = vstv %s1970_s4  ;;  %v2032_v40 = vsel %vm381_vm2, %v377_v53, %v349_v62  ;;  %s1110_s4 = scalar_lea.sflag [#allocation4], %s1584_s27 }
 0x125   : > { %628 = vrot.lane.b32.xlu0 %v606_v28, %s2512_s14  ;;  %v353_v52 = vpop.permute.xlu0 %352  ;;  %v2038_v41 = vmul.f32 %v663_v32, %v1937_v55  ;;  %v2041_v58 = vstv %s1942_s8  ;;  %v862_v30 = vmul.f32 %v852_v37, %v1876_v6  ;;  %v917_v42 = vstv %s1288_s16  ;;  %v355_v61 = vpop.permute.xlu1 %354 }
 0x126   : > { %v2006_v22 = vsel %vm381_vm2, %v379_v17, %v353_v52  ;;  %v2048_v45 = vmul.f32 %v1902_v23, %v1981_v13  ;;  %v861_v46 = vmul.f32 %v849_v4, %v1845_v43  ;;  %v858_v49 = vstv %s1983_s29  ;;  %s1462_s29 = smov [#allocation5]  }
 0x127   : > { %s2013_s26 = spop %1289  ;;  %v607_v11 = vmul.f32 %v598_v63, %v2006_v22  ;;  %v2055_v63 = vmul.f32 %v666_v38, %v1963_v56  ;;  %v863_v0 = vmul.f32 %v852_v37, %v1897_v20  ;;  %v864_v28 = vmul.f32 %v855_v29, %v1940_v27  ;;  %s1391_s16 = sshll.u32 %s1462_s29, 4  ;;  %s1392_s16 = int_to_ptr.vmem [resolvable:$false] %s1391_s16 }
 0x128   : > { %s2034_s6 = spop %1291  ;;  %v2062_v2 = vmul.f32 %v663_v32, %v2032_v40  ;;  %v865_v4 = vmul.f32 %v855_v29, %v1937_v55  ;;  %v928_v52 = vmul.f32 %v917_v42, %v1848_v44  ;;  %v2067_v17 = vstv %s2013_s26  ;;  %s1393_s26 = scalar_lea.vmem %s1392_s16, 2048 }
 0x129   : > { %876 = vrot.lane.b32.xlu0 %v860_v19, %s2518_s5  ;;  %630 = vrot.lane.b32.xlu1 %v607_v11, %s2512_s14  ;;  %2519 = vst [vmem:[#allocation13_spill] sm:$0xff] %v2067_v17  ;;  %v703_v19 = vrot.slane %v2038_v41, 1  ;;  %v866_v53 = vmul.f32 %v858_v49, %v1963_v56  ;;  %v2072_v37 = vsel %vm381_vm2, %v380_v31, %v355_v61  ;;  %v707_v41 = vrot.slane %v2055_v63, 1 }
 0x12a   : > { %2520 = vst [vmem:[#allocation14_spill] sm:$0xff] %v2072_v37  ;;  %v929_v32 = vmul.f32 %v917_v42, %v1845_v43  ;;  %v930_v29 = vmul.f32 %v917_v42, %v1879_v7  ;;  %v931_v31 = vmul.f32 %v2067_v17, %v1876_v6  ;;  %v2088_v61 = vmul.f32 %v2067_v17, %v1897_v20 }
 0x12b   : > { %s2044_s30 = spop %1293  ;;  %v705_v42 = vrot.slane %v2062_v2, 1  ;;  %v952_v10 = vrot.slane %v928_v52, 1  ;;  %v679_v8 = vmul.f32 %v666_v38, %v2072_v37  ;;  %v2098_v63 = vmul.f32 %v2024_v39, %v1937_v55 }
 0x12c   : > { %s1296_s20 = spop %1295  ;;  %v955_v35 = vrot.slane %v930_v29, 1  ;;  %v957_v37 = vrot.slane %v931_v31, 1 }
 0x12d   : > { %880 = vrot.lane.b32.xlu0 %v862_v30, %s2518_s5  ;;  %v1013_v11 = vstv %s1296_s20  ;;  %v2076_v30 = vmul.f32 %v2024_v39, %v1940_v27  ;;  %878 = vrot.lane.b32.xlu1 %v861_v46, %s2518_s5 }
 0x12e   : > { %v1024_v46 = vmul.f32 %v1013_v11, %v1848_v44  ;;  %v1025_v54 = vmul.f32 %v1013_v11, %v1845_v43  ;;  %v1026_v62 = vmul.f32 %v1013_v11, %v1879_v7  ;;  %v953_v11 = vrot.slane %v929_v32, 1 }
 0x12f   : > { %s1298_s17 = spop %1297 }
 0x130   : > { %v2081_v48 = vstv %s1298_s17  ;;  %s1300_s25 = spop %1299  ;;  %v1051_v15 = vrot.slane %v1026_v62, 2  ;;  %v2523_v62 = vrot.slane %v2088_v61, 1 }
 0x131   : > { %2521 = vst [vmem:[#allocation15_spill] sm:$0xff] %v2081_v48  ;;  %v2090_v12 = vstv %s1300_s25  ;;  %884 = vrot.lane.b32.xlu0 %v864_v28, %s2518_s5  ;;  %v1027_v23 = vmul.f32 %v2081_v48, %v1876_v6  ;;  %v678_v28 = vmul.f32 %v666_v38, %v2006_v22  ;;  %v2107_v2 = vmul.f32 %v2081_v48, %v1897_v20 }
 0x132   : > { %2522 = vst [vmem:[#allocation16_spill] sm:$0xff] %v2090_v12  ;;  %v1030_v52 = vmul.f32 %v2090_v12, %v1940_v27  ;;  %v2113_v17 = vmul.f32 %v2090_v12, %v1937_v55  ;;  %882 = vrot.lane.b32.xlu1 %v863_v0, %s2518_s5  ;;  %v1048_v48 = vrot.slane %v1024_v46, 2  ;;  %v867_v12 = vmul.f32 %v858_v49, %v2006_v22 }
 0x133   : > { %s1302_s7 = spop %1301  ;;  %v1049_v0 = vrot.slane %v1025_v54, 2  ;;  %v1053_v27 = vrot.slane %v1027_v23, 2  ;;  %v708_v32 = vrot.slane %v678_v28, 1  ;;  %v1054_v29 = vrot.slane %v2107_v2, 2 }
 0x134   : > { %v2116_v43 = vstv %s1302_s7  ;;  %v1058_v31 = vrot.slane %v1030_v52, 2  ;;  %v710_v46 = vrot.slane %v679_v8, 1  ;;  %v798_v38 = vrot.slane %v2076_v30, 2 }
 0x135   : > { %888 = vrot.lane.b32.xlu0 %v866_v53, %s2518_s5  ;;  %v1033_v36 = vmul.f32 %v2116_v43, %v1963_v56  ;;  %v2124_v5 = vmul.f32 %v2116_v43, %v2006_v22  ;;  %v1059_v53 = vrot.slane %v2113_v17, 2  ;;  %v2135_v54 = vsel %vm466_vm3, %v952_v10, %v953_v11 }
 0x136   : > { %886 = vrot.lane.b32.xlu1 %v865_v4, %s2518_s5  ;;  %v2140_v23 = vsel %vm466_vm3, %v957_v37, %v2523_v62  ;;  %v2145_v8 = vmul.f32 %v2041_v58, %v2006_v22  ;;  %v2151_v4 = vstv %s1806_s3  ;;  %v2524_v10 = vrot.slane %v2028_v57, 1 }
 0x137   : > { %v1063_v28 = vrot.slane %v1033_v36, 2  ;;  %v2525_v49 = vrot.slane %v2017_v59, 1  ;;  %v2526_v37 = vrot.slane %v1907_v1, 1  ;;  %v706_v62 = vsel %vm466_vm3, %v703_v19, %v705_v42 }
 0x138   : > { %v704_v30 = vsel %vm466_vm3, %v2524_v10, %v703_v19  ;;  %v709_v52 = vsel %vm466_vm3, %v707_v41, %v708_v32  ;;  %v2169_v57 = vsel %vm543_vm4, %v1048_v48, %v1049_v0  ;;  %v2175_v1 = vmul.f32 %v2041_v58, %v1963_v56 }
 0x139   : > { %712 = vrot.lane.b32.xlu0 %v1883_v9, %s2512_s14  ;;  %v2148_v9 = vsel %vm466_vm3, %v953_v11, %v955_v35  ;;  %v701_v36 = vsel %vm466_vm3, %v2526_v37, %v2525_v49  ;;  %v2165_v35 = vsel %vm466_vm3, %v708_v32, %v710_v46  ;;  %v796_v11 = vrot.slane %v2048_v45, 2 }
 0x13a   : > { %890 = vrot.lane.b32.xlu1 %v867_v12, %s2518_s5  ;;  %v2180_v12 = vsel %vm543_vm4, %v1053_v27, %v1054_v29  ;;  %v2183_v59 = vsel %vm543_vm4, %v1049_v0, %v1051_v15  ;;  %v2188_v48 = vsel %vm543_vm4, %v1058_v31, %v1059_v53  ;;  %v804_v41 = vrot.slane %v2145_v8, 2 }
 0x13b   : > { %v2198_v42 = vmul.f32 %v2024_v39, %v2032_v40  ;;  %v2528_v27 = vrot.slane %v2124_v5, 2  ;;  %v468_v0 = vrot.slane %v1862_v51, 1  ;;  %v470_v32 = vrot.slane %v1931_v26, 1 }
 0x13c   : > { %v521_v31 = vmul.f32 %v1826_v34, %v1879_v7  ;;  %v442_v39 = vmul.f32 %v1824_v33, %v1848_v44  ;;  %v519_v46 = vmul.f32 %v1826_v34, %v1848_v44  ;;  %v2529_v49 = vstv %s1782_s19 }
 0x13d   : > { %716 = vrot.lane.b32.xlu0 %v1949_v47, %s2512_s14  ;;  %v2527_v47 = vrot.slane %v2098_v63, 2  ;;  %v2203_v15 = vsel %vm543_vm4, %v1063_v28, %v2528_v27  ;;  %v412_v28 = vmul.f32 %v2529_v49, %v1876_v6  ;;  %v445_v51 = vmul.f32 %v1987_v24, %v1876_v6 }
 0x13e   : > { %714 = vrot.lane.b32.xlu1 %v1910_v25, %s2512_s14  ;;  %v471_v7 = vsel %vm466_vm3, %v468_v0, %v470_v32  ;;  %v446_v25 = vmul.f32 %v1987_v24, %v1897_v20  ;;  %v522_v33 = vmul.f32 %v1999_v16, %v1876_v6  ;;  %v467_v34 = vrot.slane %v442_v39, 1 }
 0x13f   : > { %v2193_v19 = vsel %vm543_vm4, %v798_v38, %v2527_v47  ;;  %v545_v38 = vrot.slane %v1866_v60, 2  ;;  %v547_v60 = vrot.slane %v521_v31, 2  ;;  %v496_v26 = vadd.f32 %v471_v7, %v1858_v50 }
 0x140   : > { %v544_v44 = vrot.slane %v519_v46, 2  ;;  %v472_v10 = vrot.slane %v445_v51, 1  ;;  %v473_v47 = vrot.slane %v446_v25, 1  ;;  %v549_v27 = vrot.slane %v522_v33, 2 }
 0x141   : > { %720 = vrot.lane.b32.xlu0 %v704_v30, %s2512_s14  ;;  %v548_v37 = vsel %vm543_vm4, %v545_v38, %v547_v60  ;;  %v523_v30 = vmul.f32 %v1999_v16, %v1897_v20  ;;  %v469_v6 = vsel %vm466_vm3, %v467_v34, %v468_v0  ;;  %v447_v31 = vmul.f32 %v1987_v24, %v1981_v13 }
 0x142   : > { %718 = vrot.lane.b32.xlu1 %v701_v36, %s2512_s14  ;;  %v2232_v32 = vadd.f32 %v548_v37, %v496_v26  ;;  %v546_v50 = vsel %vm543_vm4, %v544_v44, %v545_v38  ;;  %v495_v39 = vadd.f32 %v469_v6, %v1871_v3  ;;  %v474_v46 = vsel %vm466_vm3, %v472_v10, %v473_v47 }
 0x143   : > { %v550_v49 = vrot.slane %v523_v30, 2  ;;  %v524_v51 = vmul.f32 %v1999_v16, %v1981_v13  ;;  %v497_v36 = vadd.f32 %v474_v46, %v412_v28  ;;  %v475_v7 = vrot.slane %v447_v31, 1 }
 0x144   : > { %v2530_v60 = vstv %s1782_s19  ;;  %v2531_v38 = vstv %s1784_s23  ;;  %v2249_v33 = vadd.f32 %v546_v50, %v495_v39  ;;  %v450_v26 = vmul.f32 %v1990_v14, %v2032_v40  ;;  %s2548_s19 = sshll.u32 %s1584_s27, 6 }
 0x145   : > { %724 = vrot.lane.b32.xlu0 %v709_v52, %s2512_s14  ;;  %v413_v0 = vmul.f32 %v2530_v60, %v1897_v20  ;;  %v415_v25 = vmul.f32 %v2531_v38, %v1937_v55  ;;  %v551_v24 = vsel %vm543_vm4, %v549_v27, %v550_v49  ;;  %v552_v3 = vrot.slane %v524_v51, 2  ;;  %v2532_v27 = vld [vmem:[#allocation10_spill] sm:$0xff]  ;;  %s2414_s23 = scalar_lea.vmem [#allocation5], %s2548_s19 }
 0x146   : > { %v449_v52 = vmul.f32 %v1990_v14, %v1937_v55  ;;  %722 = vrot.lane.b32.xlu1 %v706_v62, %s2512_s14  ;;  %v2255_v16 = vadd.f32 %v551_v24, %v497_v36  ;;  %v476_v28 = vsel %vm466_vm3, %v473_v47, %v475_v7  ;;  %v526_v20 = vmul.f32 %v2002_v18, %v1937_v55  ;;  %v2535_v7 = vld [vmem:[#allocation12_spill] sm:$0xff]  ;;  %s1124_s3 = sshll.u32 %s2414_s23, 4  ;;  %s2441_s3 = int_to_ptr.vmem [resolvable:$true] %s1124_s3 }
 0x147   : > { %v498_v34 = vadd.f32 %v476_v28, %v413_v0  ;;  %v553_v44 = vsel %vm543_vm4, %v550_v49, %v552_v3  ;;  %v527_v62 = vmul.f32 %v2002_v18, %v2032_v40  ;;  %v480_v30 = vrot.slane %v450_v26, 1  ;;  %v2536_v0 = vld [vmem:[#allocation11_spill] sm:$0xff]  ;;  %p1394_p10 = scmp.lt.s32.totalorder %s2441_s3, %s1392_s16 }
 0x148   : > { %v478_v10 = vrot.slane %v449_v52, 1  ;;  %v555_v37 = vrot.slane %v526_v20, 2  ;;  %v2533_v47 = vmov %v2531_v38  ;;  %v448_v50 = vmul.f32 %v1990_v14, %v2532_v27 }
 0x149   : > { %808 = vrot.lane.b32.xlu0 %v1900_v21, %s2512_s14  ;;  %v414_v6 = vmul.f32 %v2533_v47, %v2532_v27  ;;  %v2272_v31 = vadd.f32 %v553_v44, %v498_v34  ;;  %v557_v39 = vrot.slane %v527_v62, 2  ;;  %v525_v21 = vmul.f32 %v2002_v18, %v2532_v27  ;;  %v2537_v62 = vld [vmem:[#allocation9_spill] sm:$0xff] }
 0x14a   : > { %v2534_v46 = vstv %s1786_s24  ;;  %726 = vrot.lane.b32.xlu1 %v2165_v35, %s2512_s14  ;;  %v481_v51 = vsel %vm466_vm3, %v478_v10, %v480_v30  ;;  %v477_v36 = vrot.slane %v448_v50, 1  ;;  %v451_v60 = vmul.f32 %v2535_v7, %v1963_v56  ;;  %v2538_v50 = vld [vmem:[#allocation14_spill] sm:$0xff]  ;;  %s1230_s24 = sshll.u32 %s1501_s13, 10  ;;  %s1387_s13 = scalar_lea.vmem %s2441_s3, 1024 }
 0x14b   : > { %v416_v49 = vmul.f32 %v2534_v46, %v1963_v56  ;;  %v452_v14 = vmul.f32 %v2535_v7, %v2006_v22  ;;  %v500_v38 = vadd.f32 %v481_v51, %v415_v25  ;;  %v558_v18 = vsel %vm543_vm4, %v555_v37, %v557_v39  ;;  %s2439_s28 = scalar_lea.hbm %s2489_s2, %s1230_s24  ;;  %p1388_p6 = scmp.ne.s32.totalorder %s2441_s3, %s1387_s13 }
 0x14c   : > { %v554_v24 = vrot.slane %v525_v21, 2  ;;  %v528_v3 = vmul.f32 %v2151_v4, %v1963_v56  ;;  %v479_v35 = vsel %vm466_vm3, %v477_v36, %v478_v10  ;;  %v482_v52 = vrot.slane %v451_v60, 1  ;;  %p1395_p0 = scmp.lt.s32.totalorder %s1393_s26, %s1387_s13 }
 0x14d   : > { %812 = vrot.lane.b32.xlu0 %v2536_v0, %s2512_s14  ;;  %v483_v28 = vrot.slane %v452_v14, 1  ;;  %v529_v20 = vmul.f32 %v2151_v4, %v2006_v22  ;;  %v2294_v26 = vadd.f32 %v558_v18, %v500_v38  ;;  %v499_v34 = vadd.f32 %v479_v35, %v414_v6  ;;  %p1389_p13 = pnand %p1388_p6, %p2549_p12 }
 0x14e   : > { %v556_v44 = vsel %vm543_vm4, %v554_v24, %v555_v37  ;;  %v559_v25 = vrot.slane %v528_v3, 2  ;;  %810 = vrot.lane.b32.xlu1 %v2537_v62, %s2512_s14  ;;  %v453_v10 = vmul.f32 %v2535_v7, %v2538_v50  ;;  %v530_v39 = vmul.f32 %v2151_v4, %v2538_v50  ;;  %v2540_v7 = vld [vmem:[#allocation8_spill] sm:$0xff]  ;;  %p1396_p2 = por %p1395_p0, %p1394_p10 }
 0x14f   : > { %v484_v30 = vsel %vm466_vm3, %v482_v52, %v483_v28  ;;  %v560_v47 = vrot.slane %v529_v20, 2  ;;  %v2306_v6 = vadd.f32 %v556_v44, %v499_v34  ;;  %v2539_v21 = vmov %v2534_v46  ;;  %v2543_v34 = vld [vmem:[#allocation13_spill] sm:$0xff]  ;;  %p1390_p8 = pneg %p1389_p13 }
 0x150   : > { %v501_v37 = vadd.f32 %v484_v30, %v416_v49  ;;  %v417_v46 = vmul.f32 %v2539_v21, %v2006_v22  ;;  %v803_v51 = vrot.slane %v2175_v1, 2  ;;  %v485_v60 = vrot.slane %v453_v10, 1  ;;  %v2545_v21 = vld [vmem:[#allocation15_spill] sm:$0xff] }
 0x151   : > { %816 = vrot.lane.b32.xlu0 %v2193_v19, %s2512_s14  ;;  %v561_v36 = vsel %vm543_vm4, %v559_v25, %v560_v47  ;;  %v562_v14 = vrot.slane %v530_v39, 2  ;;  %v2541_v4 = vrot.slane %v2540_v7, 2  ;;  %v801_v19 = vrot.slane %v2198_v42, 2  ;;  %p1397_p4 = pnand %p1396_p2, %p1390_p8 }
 0x152   : > { %v775_v49 = vmul.f32 %v2041_v58, %v2538_v50  ;;  %v2321_v38 = vadd.f32 %v561_v36, %v501_v37  ;;  %v805_v1 = vsel %vm543_vm4, %v803_v51, %v804_v41  ;;  %v486_v45 = vsel %vm466_vm3, %v483_v28, %v485_v60  ;;  %v2546_v36 = vld [vmem:[#allocation16_spill] sm:$0xff] }
 0x153   : > { %v797_v0 = vsel %vm543_vm4, %v2541_v4, %v796_v11  ;;  %v563_v18 = vsel %vm543_vm4, %v560_v47, %v562_v14  ;;  %v923_v24 = vstv %s2034_s6  ;;  %v502_v11 = vadd.f32 %v486_v45, %v417_v46 }
 0x154   : > { %814 = vrot.lane.b32.xlu1 %v797_v0, %s2512_s14  ;;  %v2542_v42 = vrot.slane %v2098_v63, 2  ;;  %v806_v3 = vrot.slane %v775_v49, 2  ;;  %v934_v52 = vmul.f32 %v923_v24, %v2532_v27  ;;  %v935_v20 = vmul.f32 %v923_v24, %v1937_v55 }
 0x155   : > { %820 = vrot.lane.b32.xlu0 %v805_v1, %s2512_s14  ;;  %v2334_v35 = vadd.f32 %v563_v18, %v502_v11  ;;  %v926_v28 = vstv %s2044_s30  ;;  %v933_v44 = vmul.f32 %v2543_v34, %v1981_v13  ;;  %v1029_v46 = vmul.f32 %v2545_v21, %v1981_v13 }
 0x156   : > { %v802_v58 = vsel %vm543_vm4, %v2542_v42, %v801_v19  ;;  %v807_v63 = vsel %vm543_vm4, %v804_v41, %v806_v3  ;;  %v962_v25 = vrot.slane %v934_v52, 1  ;;  %v963_v62 = vrot.slane %v935_v20, 1 }
 0x157   : > { %v937_v30 = vmul.f32 %v926_v28, %v1963_v56  ;;  %v938_v27 = vmul.f32 %v926_v28, %v2006_v22  ;;  %v960_v55 = vrot.slane %v933_v44, 1  ;;  %v939_v22 = vmul.f32 %v926_v28, %v2538_v50 }
 0x158   : > { %818 = vrot.lane.b32.xlu1 %v802_v58, %s2512_s14  ;;  %v964_v8 = vsel %vm466_vm3, %v962_v25, %v963_v62  ;;  %v2544_v41 = vrot.slane %v2088_v61, 1  ;;  %v1056_v51 = vrot.slane %v1029_v46, 2  ;;  %v1032_v60 = vmul.f32 %v2546_v36, %v2032_v40 }
 0x159   : > { %972 = vrot.lane.b32.xlu0 %v2135_v54, %s2518_s5  ;;  %v936_v54 = vmul.f32 %v923_v24, %v2032_v40  ;;  %v967_v47 = vrot.slane %v937_v30, 1  ;;  %v968_v10 = vrot.slane %v938_v27, 1  ;;  %v970_v37 = vrot.slane %v939_v22, 1 }
 0x15a   : > { %v961_v39 = vsel %vm466_vm3, %v2544_v41, %v960_v55  ;;  %v1035_v13 = vmul.f32 %v2116_v43, %v2538_v50  ;;  %v1057_v14 = vsel %vm543_vm4, %v1054_v29, %v1056_v51 }
 0x15b   : > { %v965_v56 = vrot.slane %v936_v54, 1  ;;  %v971_v61 = vsel %vm466_vm3, %v968_v10, %v970_v37 }
 0x15c   : > { %822 = vrot.lane.b32.xlu1 %v807_v63, %s2512_s14  ;;  %v1066_v40 = vrot.slane %v1035_v13, 2 }
 0x15d   : > { %976 = vrot.lane.b32.xlu0 %v2140_v23, %s2518_s5  ;;  %v969_v23 = vsel %vm466_vm3, %v967_v47, %v968_v10 }
 0x160   : > { %974 = vrot.lane.b32.xlu1 %v2148_v9, %s2518_s5  ;;  %v966_v9 = vsel %vm466_vm3, %v963_v62, %v965_v56 }
 0x161   : > { %980 = vrot.lane.b32.xlu0 %v964_v8, %s2518_s5 }
 0x164   : > { %978 = vrot.lane.b32.xlu1 %v961_v39, %s2518_s5 }
 0x165   : > { %984 = vrot.lane.b32.xlu0 %v969_v23, %s2518_s5 }
 0x168   : > { %982 = vrot.lane.b32.xlu1 %v966_v9, %s2518_s5 }
 0x169   : > { %1068 = vrot.lane.b32.xlu0 %v2169_v57, %s2518_s5  ;;  %v1061_v57 = vrot.slane %v1032_v60, 2 }
 0x16c   : > { %986 = vrot.lane.b32.xlu1 %v971_v61, %s2518_s5 }
 0x16d   : > { %1072 = vrot.lane.b32.xlu0 %v2180_v12, %s2518_s5  ;;  %v1062_v12 = vsel %vm543_vm4, %v1059_v53, %v1061_v57 }
 0x170   : > { %1070 = vrot.lane.b32.xlu1 %v2183_v59, %s2518_s5  ;;  %v2547_v59 = vrot.slane %v2124_v5, 2 }
 0x171   : > { %1076 = vrot.lane.b32.xlu0 %v2188_v48, %s2518_s5 }
 0x172   : > { %v1067_v43 = vsel %vm543_vm4, %v2547_v59, %v1066_v40 }
 0x174   : > { %1074 = vrot.lane.b32.xlu1 %v1057_v14, %s2518_s5 }
 0x175   : > { %1080 = vrot.lane.b32.xlu0 %v2203_v15, %s2518_s5 }
 0x178   : > { %1078 = vrot.lane.b32.xlu1 %v1062_v12, %s2518_s5 }
 0x17c   : > { %1082 = vrot.lane.b32.xlu1 %v1067_v43, %s2518_s5 }
 0x187   : > { %v619_v2 = vpop.permute.xlu1 %618  ;;  %v617_v29 = vpop.permute.xlu0 %616 }
 0x188   : > { %v641_v48 = vadd.f32 %v619_v2, %v2232_v32  ;;  %v640_v50 = vadd.f32 %v617_v29, %v2249_v33 }
 0x18b   : > { %v621_v15 = vpop.permute.xlu0 %620 }
 0x18c   : > { %v642_v7 = vadd.f32 %v621_v15, %v2255_v16 }
 0x18f   : > { %v623_v17 = vpop.permute.xlu1 %622 }
 0x190   : > { %v643_v53 = vadd.f32 %v623_v17, %v2272_v31 }
 0x193   : > { %v627_v4 = vpop.permute.xlu1 %626  ;;  %v625_v0 = vpop.permute.xlu0 %624 }
 0x194   : > { %v2401_v5 = vadd.f32 %v627_v4, %v2294_v26  ;;  %v644_v19 = vadd.f32 %v625_v0, %v2306_v6 }
 0x197   : > { %v629_v49 = vpop.permute.xlu0 %628 }
 0x198   : > { %v646_v1 = vadd.f32 %v629_v49, %v2321_v38 }
 0x19b   : > { %v877_v45 = vpop.permute.xlu0 %876  ;;  %v631_v32 = vpop.permute.xlu1 %630 }
 0x19c   : > { %v2406_v33 = vadd.f32 %v631_v32, %v2334_v35 }
 0x19f   : > { %v881_v18 = vpop.permute.xlu0 %880  ;;  %v879_v16 = vpop.permute.xlu1 %878 }
 0x1a3   : > { %v885_v24 = vpop.permute.xlu0 %884 }
 0x1a4   : > { %v883_v11 = vpop.permute.xlu1 %882 }
 0x1a7   : > { %v889_v31 = vpop.permute.xlu0 %888 }
 0x1a8   : > { %v2408_v42 = vpop.permute.xlu1 %886 }
 0x1ab   : > { %v713_v58 = vpop.permute.xlu0 %712 }
 0x1ac   : > { %v2410_v26 = vpop.permute.xlu1 %890  ;;  %v736_v10 = vadd.f32 %v713_v58, %v640_v50 }
 0x1af   : > { %v717_v3 = vpop.permute.xlu0 %716 }
 0x1b0   : > { %v715_v6 = vpop.permute.xlu1 %714  ;;  %v738_v41 = vadd.f32 %v717_v3, %v642_v7 }
 0x1b1   : > { %v737_v21 = vadd.f32 %v715_v6, %v641_v48 }
 0x1b3   : > { %v721_v52 = vpop.permute.xlu0 %720 }
 0x1b4   : > { %v719_v20 = vpop.permute.xlu1 %718  ;;  %v740_v46 = vadd.f32 %v721_v52, %v644_v19 }
 0x1b5   : > { %v739_v40 = vadd.f32 %v719_v20, %v643_v53 }
 0x1b7   : > { %v725_v38 = vpop.permute.xlu0 %724 }
 0x1b8   : > { %v723_v28 = vpop.permute.xlu1 %722  ;;  %v742_v12 = vadd.f32 %v725_v38, %v646_v1 }
 0x1b9   : > { %v741_v17 = vadd.f32 %v723_v28, %v2401_v5 }
 0x1bb   : > { %v809_v34 = vpop.permute.xlu0 %808 }
 0x1bc   : > { %v727_v44 = vpop.permute.xlu1 %726  ;;  %v832_v22 = vadd.f32 %v809_v34, %v736_v10 }
 0x1be   : > { %v900_v9 = vadd.f32 %v877_v45, %v832_v22 }
 0x1bf   : > { %v813_v35 = vpop.permute.xlu0 %812 }
 0x1c0   : > { %v811_v63 = vpop.permute.xlu1 %810  ;;  %v834_v37 = vadd.f32 %v813_v35, %v738_v41 }
 0x1c1   : > { %v833_v36 = vadd.f32 %v811_v63, %v737_v21 }
 0x1c2   : > { %v902_v13 = vadd.f32 %v881_v18, %v834_v37 }
 0x1c3   : > { %v817_v25 = vpop.permute.xlu0 %816  ;;  %v901_v29 = vadd.f32 %v879_v16, %v833_v36  ;;  %v743_v16 = vadd.f32 %v727_v44, %v2406_v33 }
 0x1c4   : > { %v836_v57 = vadd.f32 %v817_v25, %v740_v46 }
 0x1c6   : > { %v815_v62 = vpop.permute.xlu1 %814  ;;  %v904_v15 = vadd.f32 %v885_v24, %v836_v57 }
 0x1c7   : > { %v821_v30 = vpop.permute.xlu0 %820  ;;  %v835_v2 = vadd.f32 %v815_v62, %v739_v40 }
 0x1c8   : > { %v838_v50 = vadd.f32 %v821_v30, %v742_v12 }
 0x1c9   : > { %v903_v49 = vadd.f32 %v883_v11, %v835_v2 }
 0x1ca   : > { %v819_v27 = vpop.permute.xlu1 %818  ;;  %v906_v32 = vadd.f32 %v889_v31, %v838_v50 }
 0x1cb   : > { %v973_v55 = vpop.permute.xlu0 %972  ;;  %v837_v19 = vadd.f32 %v819_v27, %v741_v17 }
 0x1cc   : > { %v996_v61 = vadd.f32 %v973_v55, %v900_v9 }
 0x1cd   : > { %v905_v11 = vadd.f32 %v2408_v42, %v837_v19 }
 0x1ce   : > { %v823_v54 = vpop.permute.xlu1 %822 }
 0x1cf   : > { %v977_v47 = vpop.permute.xlu0 %976  ;;  %v839_v3 = vadd.f32 %v823_v54, %v743_v16 }
 0x1d0   : > { %v998_v59 = vadd.f32 %v977_v47, %v902_v13 }
 0x1d1   : > { %v907_v38 = vadd.f32 %v2410_v26, %v839_v3 }
 0x1d2   : > { %v975_v8 = vpop.permute.xlu1 %974 }
 0x1d3   : > { %v981_v56 = vpop.permute.xlu0 %980  ;;  %v997_v53 = vadd.f32 %v975_v8, %v901_v29 }
 0x1d4   : > { %v1000_v4 = vadd.f32 %v981_v56, %v904_v15 }
 0x1d6   : > { %v979_v39 = vpop.permute.xlu1 %978 }
 0x1d7   : > { %v985_v23 = vpop.permute.xlu0 %984  ;;  %v999_v24 = vadd.f32 %v979_v39, %v903_v49 }
 0x1d8   : > { %v1002_v5 = vadd.f32 %v985_v23, %v906_v32 }
 0x1da   : > { %v983_v51 = vpop.permute.xlu1 %982 }
 0x1db   : > { %v1069_v60 = vpop.permute.xlu0 %1068  ;;  %v1001_v20 = vadd.f32 %v983_v51, %v905_v11 }
 0x1dc   : > { %v1092_v14 = vadd.f32 %v1069_v60, %v996_v61 }
 0x1de   : > { %v987_v43 = vpop.permute.xlu1 %986  ;;  %1101 = vst.msk [vmem:[%s2414_s23] sm:$0xff] %vm1100_vm5, %v1092_v14 }
 0x1df   : > { %v1073_v48 = vpop.permute.xlu0 %1072  ;;  %v1003_v34 = vadd.f32 %v987_v43, %v907_v38 }
 0x1e0   : > { %v1094_v7 = vadd.f32 %v1073_v48, %v998_v59 }
 0x1e2   : > { %v1071_v0 = vpop.permute.xlu1 %1070  ;;  %1103 = vst.msk [vmem:[%s2414_s23 + $0x10] sm:$0xff] %vm1100_vm5, %v1094_v7 }
 0x1e3   : > { %v1093_v1 = vadd.f32 %v1071_v0, %v997_v53  ;;  %v1077_v45 = vpop.permute.xlu0 %1076 }
 0x1e4   : > { %v1096_v18 = vadd.f32 %v1077_v45, %v1000_v4 }
 0x1e5   : > { %1102 = vst.msk [vmem:[%s2414_s23 + $0x8] sm:$0xff] %vm1100_vm5, %v1093_v1 }
 0x1e6   : > { %v1075_v58 = vpop.permute.xlu1 %1074  ;;  %1105 = vst.msk [vmem:[%s2414_s23 + $0x20] sm:$0xff] %vm1100_vm5, %v1096_v18 }
 0x1e7   : > { %v1095_v6 = vadd.f32 %v1075_v58, %v999_v24  ;;  %v1081_v52 = vpop.permute.xlu0 %1080 }
 0x1e8   : > { %v1098_v31 = vadd.f32 %v1081_v52, %v1002_v5 }
 0x1e9   : > { %1104 = vst.msk [vmem:[%s2414_s23 + $0x18] sm:$0xff] %vm1100_vm5, %v1095_v6 }
 0x1ea   : > { %v1079_v33 = vpop.permute.xlu1 %1078  ;;  %1107 = vst.msk [vmem:[%s2414_s23 + $0x30] sm:$0xff] %vm1100_vm5, %v1098_v31 }
 0x1eb   : > { %v1097_v28 = vadd.f32 %v1079_v33, %v1001_v20 }
 0x1ed   : > { %1106 = vst.msk [vmem:[%s2414_s23 + $0x28] sm:$0xff] %vm1100_vm5, %v1097_v28 }
 0x1ee   : > { %v1083_v42 = vpop.permute.xlu1 %1082 }
 0x1ef   : > { %v1099_v44 = vadd.f32 %v1083_v42, %v1003_v34 }
 0x1f1   : > { %1108 = vst.msk [vmem:[%s2414_s23 + $0x38] sm:$0xff] %vm1100_vm5, %v1099_v44 }
 0x1f2   : > { %1400 = shalt.err (!%p1397_p4)
}
 0x1f3   : > { %s1401_s5 = scalar_lea.hbm %s2439_s28, 1024  ;;  %s1405_s20 = scalar_lea.hbm %s2489_s2, 2048 }
 0x1f4   : > { %p1402_p5 = scmp.ne.s32.totalorder %s2439_s28, %s1401_s5  ;;  %p1406_p1 = scmp.lt.u32.totalorder %s2439_s28, %s2489_s2 }
 0x1f5   : > { %p1407_p3 = scmp.lt.u32.totalorder %s1405_s20, %s1401_s5  ;;  %p1409_p6 = scmp.lt.u32.totalorder %s1401_s5, %s2439_s28 }
 0x1f6   : > { %p1403_p7 = pnand %p1402_p5, %p2549_p12 }
 0x1f7   : > { %p1408_p11 = por %p1407_p3, %p1406_p1 }
 0x1f8   : > { %p1404_p9 = pneg %p1403_p7 }
 0x1f9   : > { %p1410_p13 = por %p1409_p6, %p1408_p11 }
 0x1fb   : > { %p1411_p8 = pnand %p1410_p13, %p1404_p9 }
 0x1fd   : > { %1414 = shalt.err (!%p1411_p8)
}
 0x1fe   : > { %s1463_s7 = smov 128   ;;  %s1464_s19 = smov 8  }
 0x1ff   : > { %1305 = dma.vmem_to_hbm [thread:$0]  (%p2549_p12), %s2441_s3, 1024, %s2439_s28, %s1110_s4, %s1463_s7, %s1463_s7, %s1464_s19  }
 0x200 PF: > { %s1139_s23 = sand.u32 1, %s1441_s9   ;;  %p2550_p10 = scmp.ne.s32.totalorder %s2510_s22, 0 }
 0x201   : > { %p2551_p0 = scmp.ge.s32.totalorder %s1453_s12, 2  ;;  %s1140_s24 = scalar_lea.sflag [#allocation4], %s1139_s23 }
 0x203   : > { %p1312_p2 = pnand %p2551_p0, %p2550_p10 }
 0x205   : > { %1436 = dma.done.wait (!%p1312_p2), %s1140_s24, 1024  }
 0x206   : > { %1438 = vsyncadd (!%p1312_p2), %s1140_s24, 4294966272  ;;  %p15_p4 = scmp.ge.s32.totalorder %s1505_s15, 4   ;;  %s2552_s9 = smov %s1445_s10 }
 0x207   : > { %s2553_s10 = smov %s1449_s11  ;;  %s2554_s11 = smov %s1517_s18 }
 0x208   : > { %s2555_s12 = smov %s1505_s15  ;;  %17 = sbr.rel (!%p15_p4) target bundleno = 5 (0x5), region = 76 }
 0x20f   :  { %1145 = vsyncpa [#allocation3], 1 }
 0x210   :  { %1147 = vsyncpa [#allocation3 + $0x1], 1 }
 0x211   :  { %1148 = vsyncpa [#allocation4], 1 }
 0x212   :  { %1150 = vsyncpa [#allocation4 + $0x1], 1 }

</bundles_post_ra>
